<compile_context>
chip_gen: v5e
topology: v5e:2x2
jax: 0.10.0
libtpu: 0.0.40
codegen_flags: <defaults>
</compile_context>

<pallas_src>
import math

import jax
import jax.numpy as jnp
from jax.experimental import pallas as pl
from jax.experimental.pallas import tpu as pltpu


# ----------------------------------------------------------------------------
# Fused kernel: encoder -> two independent folded-head matmuls
# ----------------------------------------------------------------------------
def _fused_kernel(img_ref, w_enc_ref, b_enc_ref, w_head_ref, b_head_ref,
                  w_crit_ref, b_crit_ref, feat_ref, critic_ref):
    # Stand-in encoder: cast image to bf16 in-kernel (bf16 MXU operands, f32
    # accumulation), bias + ReLU in f32 on the VPU.
    img = img_ref[...].astype(jnp.bfloat16)
    enc = jnp.dot(img, w_enc_ref[...], preferred_element_type=jnp.float32)
    enc = jnp.maximum(enc + b_enc_ref[...], 0.0)
    enc_bf = enc.astype(jnp.bfloat16)

    # Features: relu(enc) @ W_head + b_head   (== linear2(linear1(concat)))
    feat_ref[...] = (jnp.dot(enc_bf, w_head_ref[...],
                             preferred_element_type=jnp.float32)
                     + b_head_ref[...])

    # Critic: relu(enc) @ W_crit + b_crit     (== critic_linear(features))
    # W_crit zero-padded to 128 lanes -> lane-dense, unmasked (TM, 128) store;
    # column 0 holds the scalar value. Independent of the feature matmul.
    critic_ref[...] = (jnp.dot(enc_bf, w_crit_ref[...],
                               preferred_element_type=jnp.float32)
                       + b_crit_ref[...])


# ----------------------------------------------------------------------------
# One-time parameter preparation (hoisted out of the forward path)
# ----------------------------------------------------------------------------
def prepare_params(params, num_channels):
    """Fold the fully-linear head and cast MXU operands to bf16, ONCE."""
    hidden = params["w_enc"].shape[1]
    assert params["w1"].shape[0] == num_channels * hidden

    # concat([enc]*C) @ w1 == enc @ (sum of the C (hidden, 2h) row blocks)
    w1f = params["w1"].reshape(num_channels, hidden, 2 * hidden).sum(axis=0)

    # Full head fold, computed in f32, cast to bf16 once.
    w_head = w1f @ params["w2"]                           # (hidden, hidden)
    b_head = params["b1"] @ params["w2"] + params["b2"]   # (1, hidden)
    w_crit = w_head @ params["wc"]                        # (hidden, 1)
    b_crit = b_head @ params["wc"] + params["bc"]         # (1, 1)

    lanes = 128
    w_crit = jnp.pad(w_crit, ((0, 0), (0, lanes - w_crit.shape[1])))
    b_crit = jnp.pad(b_crit, ((0, 0), (0, lanes - b_crit.shape[1])))

    return dict(
        w_enc=params["w_enc"].astype(jnp.bfloat16),
        b_enc=params["b_enc"].astype(jnp.float32),
        w_head=w_head.astype(jnp.bfloat16),
        b_head=b_head.astype(jnp.float32),
        w_crit=w_crit.astype(jnp.bfloat16),
        b_crit=b_crit.astype(jnp.float32),
    )


# ----------------------------------------------------------------------------
# Forward wrapper (jitted so the slice/reshape/pad glue fuses with the call)
# ----------------------------------------------------------------------------
@jax.jit
def reward_prediction_forward(inputs, rnn_hxs, masks, prepared):
    """Returns (critic_value (B,1), features (B,hidden), rnn_hxs)."""
    del masks  # recurrent=False -> masks unused in the torch forward
    B, C, H, W = inputs.shape
    HW = H * W
    hidden = prepared["w_enc"].shape[1]

    # --- M tiling: sublane-aligned row tiles, "parallel" for megacore -------
    TM = min(256, ((B + 7) // 8) * 8)
    Bp = ((B + TM - 1) // TM) * TM
    grid_m = Bp // TM

    # Torch loop always encodes channel 0; flatten once (fused under jit).
    img0 = inputs[:, 0, :, :].reshape(B, HW).astype(jnp.float32)
    if Bp != B:
        img0 = jnp.pad(img0, ((0, Bp - B), (0, 0)))

    # --- advisory cost estimate for the XLA scheduler ---
    flops = 2 * Bp * (HW * hidden + hidden * hidden + hidden * 128)
    bytes_accessed = (
        Bp * HW * 4                      # image (f32 in)
        + HW * hidden * 2                # encoder weight (bf16)
        + hidden * hidden * 2            # folded head weight (bf16)
        + hidden * 128 * 2               # folded critic weight (bf16)
        + hidden * 4 * 2 + 128 * 4       # biases (f32)
        + Bp * hidden * 4 + Bp * 128 * 4)  # outputs (f32)
    ce = pl.CostEstimate(flops=flops, transcendentals=0,
                         bytes_accessed=bytes_accessed)

    feats_p, critic_p = pl.pallas_call(
        _fused_kernel,
        grid=(grid_m,),
        in_specs=[
            pl.BlockSpec((TM, HW), lambda i: (i, 0)),           # channel-0 image
            pl.BlockSpec((HW, hidden), lambda i: (0, 0)),       # encoder weight
            pl.BlockSpec((1, hidden), lambda i: (0, 0)),        # encoder bias
            pl.BlockSpec((hidden, hidden), lambda i: (0, 0)),   # folded W_head
            pl.BlockSpec((1, hidden), lambda i: (0, 0)),        # folded b_head
            pl.BlockSpec((hidden, 128), lambda i: (0, 0)),      # folded W_crit
            pl.BlockSpec((1, 128), lambda i: (0, 0)),           # folded b_crit
        ],
        out_specs=(
            pl.BlockSpec((TM, hidden), lambda i: (i, 0)),
            pl.BlockSpec((TM, 128), lambda i: (i, 0)),
        ),
        out_shape=(
            jax.ShapeDtypeStruct((Bp, hidden), jnp.float32),
            jax.ShapeDtypeStruct((Bp, 128), jnp.float32),
        ),
        compiler_params=pltpu.CompilerParams(
            dimension_semantics=("parallel",)),
        cost_estimate=ce,
    )(img0, prepared["w_enc"], prepared["b_enc"], prepared["w_head"],
      prepared["b_head"], prepared["w_crit"], prepared["b_crit"])

    feats = feats_p[:B]
    critic = critic_p[:B, :1]
    return critic, feats, rnn_hxs


# ----------------------------------------------------------------------------
# Deterministic parameter init (mirrors the torch init_ helpers:
# orthogonal weights w/ relu gain for linear1/2, gain 1 for critic, zero bias)
# ----------------------------------------------------------------------------
def make_params(key, H, W, hidden):
    HW = H * W
    relu_gain = math.sqrt(2.0)
    k_enc, k1, k2, kc = jax.random.split(key, 4)
    ortho = jax.nn.initializers.orthogonal
    return dict(
        w_enc=ortho(1.0)(k_enc, (HW, hidden), jnp.float32),
        b_enc=jnp.zeros((1, hidden), jnp.float32),
        w1=ortho(relu_gain)(k1, (4 * hidden, 2 * hidden), jnp.float32),
        b1=jnp.zeros((1, 2 * hidden), jnp.float32),
        w2=ortho(relu_gain)(k2, (2 * hidden, hidden), jnp.float32),
        b2=jnp.zeros((1, hidden), jnp.float32),
        wc=ortho(1.0)(kc, (hidden, 1), jnp.float32),
        bc=jnp.zeros((1, 1), jnp.float32),
    )


if __name__ == "__main__":
    key = jax.random.PRNGKey(0)
    k_in, k_par = jax.random.split(key)

    # 4 "time" channels so the concatenated encoder features have width
    # hidden*4 == linear1 input.
    B, C, H, W = 2, 4, 16, 16
    hidden = 256

    inputs = jax.random.normal(k_in, (B, C, H, W), jnp.float32)
    rnn_hxs = jnp.zeros((B, 1), jnp.float32)   # recurrent_hidden_state_size == 1
    masks = jnp.ones((B, 1), jnp.float32)

    params = make_params(k_par, H, W, hidden)
    # One-time weight folding / casting (hoisted out of the forward path).
    prepared = jax.tree_util.tree_map(jax.block_until_ready,
                                      prepare_params(params, C))

    critic, feats, hxs_out = reward_prediction_forward(
        inputs, rnn_hxs, masks, prepared)
    jax.block_until_ready((critic, feats, hxs_out))

    assert critic.shape == (B, 1)
    assert feats.shape == (B, hidden)
    assert hxs_out.shape == rnn_hxs.shape
    print("KERNEL_OK")
</pallas_src>

<mosaic_0001>
module attributes {stable_mosaic.version = 11 : i64} {
  func.func @_fused_kernel(%arg0: i32, %arg1: memref<8x256xf32, #tpu.memory_space<vmem>>, %arg2: memref<256x256xbf16, #tpu.memory_space<vmem>>, %arg3: memref<1x256xf32, #tpu.memory_space<vmem>>, %arg4: memref<256x256xbf16, #tpu.memory_space<vmem>>, %arg5: memref<1x256xf32, #tpu.memory_space<vmem>>, %arg6: memref<256x128xbf16, #tpu.memory_space<vmem>>, %arg7: memref<1x128xf32, #tpu.memory_space<vmem>>, %arg8: memref<8x256xf32, #tpu.memory_space<vmem>>, %arg9: memref<8x128xf32, #tpu.memory_space<vmem>>) attributes {dimension_semantics = [#tpu.dimension_semantics<parallel>], iteration_bounds = array<i64: 1>, scalar_prefetch = 0 : i64, scratch_operands = 0 : i64, tpu.core_type = #tpu.core_type<tc>, window_params = [{transform_indices = @transform_0, window_bounds = array<i64: 8, 256>}, {pipeline_mode = #tpu.pipeline_mode<synchronous>, transform_indices = @transform_1, window_bounds = array<i64: 256, 256>}, {pipeline_mode = #tpu.pipeline_mode<synchronous>, transform_indices = @transform_2, window_bounds = array<i64: 1, 256>}, {pipeline_mode = #tpu.pipeline_mode<synchronous>, transform_indices = @transform_3, window_bounds = array<i64: 256, 256>}, {pipeline_mode = #tpu.pipeline_mode<synchronous>, transform_indices = @transform_4, window_bounds = array<i64: 1, 256>}, {pipeline_mode = #tpu.pipeline_mode<synchronous>, transform_indices = @transform_5, window_bounds = array<i64: 256, 128>}, {pipeline_mode = #tpu.pipeline_mode<synchronous>, transform_indices = @transform_6, window_bounds = array<i64: 1, 128>}, {transform_indices = @transform_7, window_bounds = array<i64: 8, 256>}, {transform_indices = @transform_8, window_bounds = array<i64: 8, 128>}]} {
    %c0 = arith.constant 0 : index
    %c0_0 = arith.constant 0 : index
    %0 = vector.load %arg1[%c0, %c0_0] : memref<8x256xf32, #tpu.memory_space<vmem>>, vector<8x256xf32>
    %1 = arith.truncf %0 : vector<8x256xf32> to vector<8x256xbf16>
    %c0_1 = arith.constant 0 : index
    %c0_2 = arith.constant 0 : index
    %2 = vector.load %arg2[%c0_1, %c0_2] : memref<256x256xbf16, #tpu.memory_space<vmem>>, vector<256x256xbf16>
    %cst = arith.constant dense<0.000000e+00> : vector<8x256xf32>
    %3 = tpu.matmul %1, %2, %cst {dimension_numbers = #tpu.dot_dimension_numbers<[1], [0], [0], [1], [0, 0, 1, 1], [], []>} : vector<8x256xbf16>, vector<256x256xbf16>, vector<8x256xf32> -> vector<8x256xf32>
    %c0_3 = arith.constant 0 : index
    %c0_4 = arith.constant 0 : index
    %4 = vector.load %arg3[%c0_3, %c0_4] : memref<1x256xf32, #tpu.memory_space<vmem>>, vector<1x256xf32>
    %5 = vector.broadcast %4 : vector<1x256xf32> to vector<8x256xf32>
    %6 = arith.addf %3, %5 : vector<8x256xf32>
    %cst_5 = arith.constant 0.000000e+00 : f32
    %7 = vector.broadcast %cst_5 : f32 to vector<8x256xf32>
    %8 = arith.maximumf %6, %7 : vector<8x256xf32>
    %9 = arith.truncf %8 : vector<8x256xf32> to vector<8x256xbf16>
    %c0_6 = arith.constant 0 : index
    %c0_7 = arith.constant 0 : index
    %10 = vector.load %arg4[%c0_6, %c0_7] : memref<256x256xbf16, #tpu.memory_space<vmem>>, vector<256x256xbf16>
    %cst_8 = arith.constant dense<0.000000e+00> : vector<8x256xf32>
    %11 = tpu.matmul %9, %10, %cst_8 {dimension_numbers = #tpu.dot_dimension_numbers<[1], [0], [0], [1], [0, 0, 1, 1], [], []>} : vector<8x256xbf16>, vector<256x256xbf16>, vector<8x256xf32> -> vector<8x256xf32>
    %c0_9 = arith.constant 0 : index
    %c0_10 = arith.constant 0 : index
    %12 = vector.load %arg5[%c0_9, %c0_10] : memref<1x256xf32, #tpu.memory_space<vmem>>, vector<1x256xf32>
    %13 = vector.broadcast %12 : vector<1x256xf32> to vector<8x256xf32>
    %14 = arith.addf %11, %13 : vector<8x256xf32>
    %c0_11 = arith.constant 0 : index
    %c0_12 = arith.constant 0 : index
    %15 = vector.load %arg8[%c0_11, %c0_12] : memref<8x256xf32, #tpu.memory_space<vmem>>, vector<8x256xf32>
    tpu.vector_store %arg8[%c0_11, %c0_12], %14 {strides = array<i32>} : memref<8x256xf32, #tpu.memory_space<vmem>>, vector<8x256xf32>,
    %c0_13 = arith.constant 0 : index
    %c0_14 = arith.constant 0 : index
    %16 = vector.load %arg6[%c0_13, %c0_14] : memref<256x128xbf16, #tpu.memory_space<vmem>>, vector<256x128xbf16>
    %cst_15 = arith.constant dense<0.000000e+00> : vector<8x128xf32>
    %17 = tpu.matmul %9, %16, %cst_15 {dimension_numbers = #tpu.dot_dimension_numbers<[1], [0], [0], [1], [0, 0, 1, 1], [], []>} : vector<8x256xbf16>, vector<256x128xbf16>, vector<8x128xf32> -> vector<8x128xf32>
    %c0_16 = arith.constant 0 : index
    %c0_17 = arith.constant 0 : index
    %18 = vector.load %arg7[%c0_16, %c0_17] : memref<1x128xf32, #tpu.memory_space<vmem>>, vector<1x128xf32>
    %19 = vector.broadcast %18 : vector<1x128xf32> to vector<8x128xf32>
    %20 = arith.addf %17, %19 : vector<8x128xf32>
    %c0_18 = arith.constant 0 : index
    %c0_19 = arith.constant 0 : index
    %21 = vector.load %arg9[%c0_18, %c0_19] : memref<8x128xf32, #tpu.memory_space<vmem>>, vector<8x128xf32>
    tpu.vector_store %arg9[%c0_18, %c0_19], %20 {strides = array<i32>} : memref<8x128xf32, #tpu.memory_space<vmem>>, vector<8x128xf32>,
    return
  }
  func.func @transform_0(%arg0: i32) -> (i32, i32) {
    %c0_i32 = arith.constant 0 : i32
    %c0_i32_0 = arith.constant 0 : i32
    return %arg0, %c0_i32 : i32, i32
  }
  func.func @transform_1(%arg0: i32) -> (i32, i32) {
    %c0_i32 = arith.constant 0 : i32
    %c0_i32_0 = arith.constant 0 : i32
    %c0_i32_1 = arith.constant 0 : i32
    return %c0_i32, %c0_i32_0 : i32, i32
  }
  func.func @transform_2(%arg0: i32) -> (i32, i32) {
    %c0_i32 = arith.constant 0 : i32
    %c0_i32_0 = arith.constant 0 : i32
    %c0_i32_1 = arith.constant 0 : i32
    return %c0_i32, %c0_i32_0 : i32, i32
  }
  func.func @transform_3(%arg0: i32) -> (i32, i32) {
    %c0_i32 = arith.constant 0 : i32
    %c0_i32_0 = arith.constant 0 : i32
    %c0_i32_1 = arith.constant 0 : i32
    return %c0_i32, %c0_i32_0 : i32, i32
  }
  func.func @transform_4(%arg0: i32) -> (i32, i32) {
    %c0_i32 = arith.constant 0 : i32
    %c0_i32_0 = arith.constant 0 : i32
    %c0_i32_1 = arith.constant 0 : i32
    return %c0_i32, %c0_i32_0 : i32, i32
  }
  func.func @transform_5(%arg0: i32) -> (i32, i32) {
    %c0_i32 = arith.constant 0 : i32
    %c0_i32_0 = arith.constant 0 : i32
    %c0_i32_1 = arith.constant 0 : i32
    return %c0_i32, %c0_i32_0 : i32, i32
  }
  func.func @transform_6(%arg0: i32) -> (i32, i32) {
    %c0_i32 = arith.constant 0 : i32
    %c0_i32_0 = arith.constant 0 : i32
    %c0_i32_1 = arith.constant 0 : i32
    return %c0_i32, %c0_i32_0 : i32, i32
  }
  func.func @transform_7(%arg0: i32) -> (i32, i32) {
    %c0_i32 = arith.constant 0 : i32
    %c0_i32_0 = arith.constant 0 : i32
    return %arg0, %c0_i32 : i32, i32
  }
  func.func @transform_8(%arg0: i32) -> (i32, i32) {
    %c0_i32 = arith.constant 0 : i32
    %c0_i32_0 = arith.constant 0 : i32
    return %arg0, %c0_i32 : i32, i32
  }
}

</mosaic_0001>

<bundles_post_ra>
// kernel: squeeze.1
= control target key start
LH: loop header
LB: loop body
LE: loop exit
PB: predicated region body
PF: predicated region fallthrough
CT: control target
= control target key end

     0   :  { %s8_s6 = smov 3  ;;  %s11_s7 = smov 12  ;;  %vm13_vm0 = vcmask 1043458   ;;  %vm3_vm1 = vcmask 130048   ;;  %vm17_vm2 = vcmask 1048448   ;;  %vm31_vm3 = vcmask 917248   ;;  %s214_s0 = inlined_call_operand.vmem [shape: f32[2,1,16,16], index: 0, kind: input, shape index: {}]   ;;  %s215_s1 = inlined_call_operand.vmem [shape: f32[2,256], index: 1, kind: output, shape index: {}]  }
   0x1   :  { %v117_v0 = vld [vmem:[%s214_s0 + $0x7] ss:$16 sm:%s8_s6]   ;;  %v118_v1 = vld [vmem:[%s214_s0 - $0x11] ss:$16 sm:%s11_s7]   ;;  %s36_s12 = smov 3  ;;  %s39_s15 = smov 12 }
   0x2   :  { %v14_v2 = vsel %vm13_vm0, %v118_v1, %v117_v0  ;;  %v121_v3 = vld [vmem:[%s214_s0 + $0x5] ss:$16 sm:%s36_s12]   ;;  %s139_s16 = smov 112   ;;  %v122_v4 = vld [vmem:[%s214_s0 - $0x13] ss:$16 sm:%s39_s15]   ;;  %s22_s19 = smov 3 }
   0x3   :  { %15 = vrot.lane.b32.xlu0 %v14_v2, %s139_s16  ;;  %s25_s20 = smov 12  ;;  %v42_v5 = vsel %vm13_vm0, %v122_v4, %v121_v3  ;;  %v119_v6 = vld [vmem:[%s214_s0 + $0x6] ss:$16 sm:%s22_s19]   ;;  %s50_s23 = smov 3  ;;  %vm45_vm4 = vcmask 786048   ;;  %vm59_vm5 = vcmask 654848  }
   0x4   :  { %s140_s24 = smov 80   ;;  %v120_v7 = vld [vmem:[%s214_s0 - $0x12] ss:$16 sm:%s25_s20]   ;;  %s53_s27 = smov 12  ;;  %v123_v8 = vld [vmem:[%s214_s0 + $0x4] ss:$16 sm:%s50_s23]  }
   0x5   :  { %43 = vrot.lane.b32.xlu1 %v42_v5, %s140_s24  ;;  %v124_v9 = vld [vmem:[%s214_s0 - $0x14] ss:$16 sm:%s53_s27]   ;;  %s92_s3 = smov 3  ;;  %s64_s4 = smov 3  ;;  %v28_v10 = vsel %vm13_vm0, %v120_v7, %v119_v6  ;;  %vm73_vm6 = vcmask 523648   ;;  %vm87_vm7 = vcmask 392448  }
   0x6   :  { %v125_v11 = vld [vmem:[%s214_s0 + $0x3] ss:$16 sm:%s64_s4]   ;;  %s67_s7 = smov 12  ;;  %s95_s8 = smov 12  ;;  %v56_v13 = vsel %vm13_vm0, %v124_v9, %v123_v8  ;;  %v129_v15 = vld [vmem:[%s214_s0 + $0x1] ss:$16 sm:%s92_s3]  }
   0x7   :  { %v126_v12 = vld [vmem:[%s214_s0 - $0x15] ss:$16 sm:%s67_s7]   ;;  %s78_s11 = smov 3  ;;  %s81_s12 = smov 12  ;;  %v130_v16 = vld [vmem:[%s214_s0 - $0x17] ss:$16 sm:%s95_s8]  }
   0x8   :  { %v70_v14 = vsel %vm13_vm0, %v126_v12, %v125_v11  ;;  %s141_s13 = smov 96   ;;  %s142_s16 = smov 48   ;;  %v127_v17 = vld [vmem:[%s214_s0 + $0x2] ss:$16 sm:%s78_s11]   ;;  %v128_v18 = vld [vmem:[%s214_s0 - $0x16] ss:$16 sm:%s81_s12]   ;;  %v98_v19 = vsel %vm13_vm0, %v130_v16, %v129_v15 }
   0x9   :  { %71 = vrot.lane.b32.xlu2 %v70_v14, %s142_s16  ;;  %s143_s21 = smov 64   ;;  %v84_v20 = vsel %vm13_vm0, %v128_v18, %v127_v17  ;;  %s144_s24 = smov 16   ;;  %v2_v21 = vld [vmem:[%s214_s0] ss:$8 sm:$0xf]   ;;  %vm101_vm8 = vcmask 261248  }
   0xa   :  { %s145_s25 = smov 32   ;;  %4 = vst.msk [vmem:[#allocation0] ss:$8 sm:$0x3] %vm3_vm1, %v2_v21  }
   0xb   :  { %29 = vrot.lane.b32.xlu0 %v28_v10, %s141_s13  ;;  %6 = vst.msk [vmem:[#allocation0 - $0xf] ss:$8 sm:$0xc] %vm3_vm1, %v2_v21  }
   0xd   :  { %57 = vrot.lane.b32.xlu1 %v56_v13, %s143_s21 }
  0x11   :  { %85 = vrot.lane.b32.xlu2 %v84_v20, %s145_s25 }
  0x13   :  { %99 = vrot.lane.b32.xlu0 %v98_v19, %s144_s24 }
  0x63   :  { %v72_v22 = vpop.permute.xlu2 %71  }
  0x6b   :  { %v86_v23 = vpop.permute.xlu2 %85  }
  0x75   :  { %v16_v24 = vpop.permute.xlu0 %15  }
  0x76   :  { %18 = vst.msk [vmem:[#allocation0] sm:$0x3] %vm17_vm2, %v16_v24  }
  0x77   :  { %20 = vst.msk [vmem:[#allocation0 + $0x6] sm:$0xc] %vm17_vm2, %v16_v24   ;;  %v44_v25 = vpop.permute.xlu1 %43  }
  0x7d   :  { %v30_v26 = vpop.permute.xlu0 %29  }
  0x7e   :  { %32 = vst.msk [vmem:[#allocation0] sm:$0x3] %vm31_vm3, %v30_v26  }
  0x7f   :  { %34 = vst.msk [vmem:[#allocation0 + $0x6] sm:$0xc] %vm31_vm3, %v30_v26   ;;  %v58_v27 = vpop.permute.xlu1 %57  }
  0x80   :  { %46 = vst.msk [vmem:[#allocation0] sm:$0x3] %vm45_vm4, %v44_v25  }
  0x81   :  { %48 = vst.msk [vmem:[#allocation0 + $0x6] sm:$0xc] %vm45_vm4, %v44_v25  }
  0x82   :  { %60 = vst.msk [vmem:[#allocation0] sm:$0x3] %vm59_vm5, %v58_v27  }
  0x83   :  { %62 = vst.msk [vmem:[#allocation0 + $0x6] sm:$0xc] %vm59_vm5, %v58_v27  }
  0x84   :  { %74 = vst.msk [vmem:[#allocation0] sm:$0x3] %vm73_vm6, %v72_v22  }
  0x85   :  { %76 = vst.msk [vmem:[#allocation0 + $0x6] sm:$0xc] %vm73_vm6, %v72_v22   ;;  %v100_v28 = vpop.permute.xlu0 %99  }
  0x86   :  { %88 = vst.msk [vmem:[#allocation0] sm:$0x3] %vm87_vm7, %v86_v23  }
  0x87   :  { %90 = vst.msk [vmem:[#allocation0 + $0x6] sm:$0xc] %vm87_vm7, %v86_v23  }
  0x88   :  { %102 = vst.msk [vmem:[#allocation0] sm:$0x3] %vm101_vm8, %v100_v28  }
  0x89   :  { %104 = vst.msk [vmem:[#allocation0 + $0x6] sm:$0xc] %vm101_vm8, %v100_v28  }
  0x8f   :  { %v107_v29 = vld [vmem:[#allocation0] sm:$0x3] }
  0x90   :  { %110 = vst [vmem:[%s215_s1] sm:$0x3] %v107_v29  ;;  %v112_v30 = vld [vmem:[#allocation0 + $0x8] sm:$0x3] }
  0x91   :  { %131 = vst [vmem:[%s215_s1 + $0x2] sm:$0x3] %v112_v30 }

// kernel: reward_prediction_forward.1
= control target key start
LH: loop header
LB: loop body
LE: loop exit
PB: predicated region body
PF: predicated region fallthrough
CT: control target
= control target key end

     0   :  { %14 = vsyncpa [#allocation3], 0  ;;  %s1323_s0 = inlined_call_operand.vmem [shape: f32[8,256], index: 0, kind: input, shape index: {}]   ;;  %s1324_s1 = inlined_call_operand.hbm [shape: bf16[256,256], index: 1, kind: input, shape index: {}]   ;;  %s1325_s2 = inlined_call_operand.vmem [shape: f32[1,256], index: 2, kind: input, shape index: {}]   ;;  %s1326_s3 = inlined_call_operand.hbm [shape: bf16[256,256], index: 3, kind: input, shape index: {}]   ;;  %s1327_s4 = inlined_call_operand.vmem [shape: f32[1,256], index: 4, kind: input, shape index: {}]   ;;  %s1328_s5 = inlined_call_operand.hbm [shape: bf16[256,128], index: 5, kind: input, shape index: {}]   ;;  %s1329_s6 = inlined_call_operand.vmem [shape: f32[1,128], index: 6, kind: input, shape index: {}]   ;;  %s1330_s7 = inlined_call_operand.vmem [shape: f32[8,256], index: 7, kind: output, shape index: {0}]   ;;  %s1331_s8 = inlined_call_operand.vmem [shape: f32[8,128], index: 8, kind: output, shape index: {1}]  }
   0x1   :  { %15 = vsyncpa [#allocation5], 0  ;;  %s37_s29 = sshll.u32 %s1326_s3, 4  ;;  %s1238_s30 = smov [#allocation4]   ;;  %s38_s29 = int_to_ptr.hbm [resolvable:$true] %s37_s29 }
   0x2   :  { %s39_s9 = sshll.u32 %s1238_s30, 4  ;;  %s22_s12 = sshll.u32 %s1324_s1, 4  ;;  %s40_s9 = int_to_ptr.vmem [resolvable:$true] %s39_s9  ;;  %s23_s12 = int_to_ptr.hbm [resolvable:$true] %s22_s12 }
   0x3   :  { %s1239_s13 = smov 128   ;;  %s1240_s14 = smov 8  }
   0x4   :  { %45 = dma.hbm_to_vmem [thread:$0]  %s38_s29, 4096, %s40_s9, [#allocation5], %s1239_s13, %s1239_s13, %s1240_s14  }
   0x5   :  { %s1241_s15 = smov [#allocation2]   ;;  %s52_s19 = sshll.u32 %s1328_s5, 4  ;;  %s53_s19 = int_to_ptr.hbm [resolvable:$true] %s52_s19 }
   0x6   :  { %s24_s16 = sshll.u32 %s1241_s15, 4  ;;  %s1242_s3 = smov [#allocation6]   ;;  %s25_s16 = int_to_ptr.vmem [resolvable:$true] %s24_s16 }
   0x7   :  { %30 = dma.hbm_to_vmem [thread:$0]  %s23_s12, 4096, %s25_s16, [#allocation3], %s1239_s13, %s1239_s13, %s1240_s14  }
   0x8   :  { %s54_s20 = sshll.u32 %s1242_s3, 4  ;;  %s1243_s21 = smov 64   ;;  %s55_s20 = int_to_ptr.vmem [resolvable:$true] %s54_s20 }
   0x9   :  { %s1244_s22 = smov 4  }
   0xa   :  { %60 = dma.hbm_to_vmem [thread:$0]  %s53_s19, 2048, %s55_s20, [#allocation5], %s1243_s21, %s1243_s21, %s1244_s22  }
   0xb   :  { %1234 = dma.done.wait [#allocation3], 4096  }
   0xc   :  { %1235 = vsyncadd [#allocation3], 4294963200 }
   0xd   :  { %1236 = dma.done.wait [#allocation5], 6144  }
   0xe   :  { %1237 = vsyncadd [#allocation5], 4294961152  ;;  %v812_v0 = vld [vmem:[#allocation2 + $0x70] sm:$0xf]  ;;  %v1089_v1 = vld [vmem:[#allocation2 + $0x74] sm:$0xf0] }
   0xf   :  { %v876_v2 = vld [vmem:[#allocation2 + $0xf0] sm:$0xf]  ;;  %v813_v3 = vor.u32 %v1089_v1, %v812_v0  ;;  %v1105_v4 = vld [vmem:[#allocation2 + $0xf4] sm:$0xf0]  ;;  %v1088_v5 = vld [vmem:[#allocation2 + $0x74] sm:$0xf] }
  0x10   :  { %v814_v6 = vld [vmem:[#allocation2 + $0x78] sm:$0xf0]  ;;  %v877_v7 = vor.u32 %v1105_v4, %v876_v2  ;;  %v1104_v9 = vld [vmem:[#allocation2 + $0xf4] sm:$0xf]  ;;  %v804_v11 = vld [vmem:[#allocation2 + $0x60] sm:$0xf] }
  0x11   :  { %v817_v8 = vor.u32 %v1088_v5, %v814_v6  ;;  %v878_v10 = vld [vmem:[#allocation2 + $0xf8] sm:$0xf0]  ;;  %277 = vmatpush.bf16.msra.mxu0 %v813_v3  ;;  %v1087_v13 = vld [vmem:[#allocation2 + $0x64] sm:$0xf0]  ;;  %v868_v14 = vld [vmem:[#allocation2 + $0xe0] sm:$0xf] }
  0x12   :  { %v881_v12 = vor.u32 %v1104_v9, %v878_v10  ;;  %v1103_v15 = vld [vmem:[#allocation2 + $0xe4] sm:$0xf0]  ;;  %290 = vmatpush.bf16.msra.mxu1 %v877_v7  ;;  %v805_v16 = vor.u32 %v1087_v13, %v804_v11  ;;  %v1086_v18 = vld [vmem:[#allocation2 + $0x64] sm:$0xf]  ;;  %v806_v19 = vld [vmem:[#allocation2 + $0x68] sm:$0xf0] }
  0x13   :  { %303 = vmatpush.bf16.msra.mxu2 %v817_v8  ;;  %v869_v17 = vor.u32 %v1103_v15, %v868_v14  ;;  %v1102_v20 = vld [vmem:[#allocation2 + $0xe4] sm:$0xf]  ;;  %v809_v21 = vor.u32 %v1086_v18, %v806_v19  ;;  %v870_v22 = vld [vmem:[#allocation2 + $0xe8] sm:$0xf0]  ;;  %v796_v23 = vld [vmem:[#allocation2 + $0x50] sm:$0xf] }
  0x14   :  { %316 = vmatpush.bf16.msra.mxu3 %v881_v12  ;;  %v1085_v24 = vld [vmem:[#allocation2 + $0x54] sm:$0xf0]  ;;  %v873_v25 = vor.u32 %v1102_v20, %v870_v22  ;;  %v860_v26 = vld [vmem:[#allocation2 + $0xd0] sm:$0xf]  ;;  %v1084_v28 = vld [vmem:[#allocation2 + $0x54] sm:$0xf] }
  0x15   :  { %v1101_v27 = vld [vmem:[#allocation2 + $0xd4] sm:$0xf0]  ;;  %278 = vmatpush.bf16.msra.mxu0 %v805_v16  ;;  %v797_v29 = vor.u32 %v1085_v24, %v796_v23  ;;  %v798_v30 = vld [vmem:[#allocation2 + $0x58] sm:$0xf0]  ;;  %v1100_v31 = vld [vmem:[#allocation2 + $0xd4] sm:$0xf] }
  0x16   :  { %v862_v32 = vld [vmem:[#allocation2 + $0xd8] sm:$0xf0]  ;;  %291 = vmatpush.bf16.msra.mxu1 %v869_v17  ;;  %v861_v33 = vor.u32 %v1101_v27, %v860_v26  ;;  %v801_v34 = vor.u32 %v1084_v28, %v798_v30  ;;  %v788_v35 = vld [vmem:[#allocation2 + $0x40] sm:$0xf]  ;;  %v1083_v36 = vld [vmem:[#allocation2 + $0x44] sm:$0xf0] }
  0x17   :  { %304 = vmatpush.bf16.msra.mxu2 %v809_v21  ;;  %v852_v37 = vld [vmem:[#allocation2 + $0xc0] sm:$0xf]  ;;  %v865_v38 = vor.u32 %v1100_v31, %v862_v32  ;;  %v1099_v39 = vld [vmem:[#allocation2 + $0xc4] sm:$0xf0]  ;;  %v1082_v40 = vld [vmem:[#allocation2 + $0x44] sm:$0xf]  ;;  %v789_v44 = vor.u32 %v1083_v36, %v788_v35 }
  0x18   :  { %317 = vmatpush.bf16.msra.mxu3 %v873_v25  ;;  %v790_v41 = vld [vmem:[#allocation2 + $0x48] sm:$0xf0]  ;;  %v1098_v42 = vld [vmem:[#allocation2 + $0xc4] sm:$0xf]  ;;  %v853_v45 = vor.u32 %v1099_v39, %v852_v37  ;;  %v780_v47 = vld [vmem:[#allocation2 + $0x30] sm:$0xf] }
  0x19   :  { %v854_v43 = vld [vmem:[#allocation2 + $0xc8] sm:$0xf0]  ;;  %279 = vmatpush.bf16.msra.mxu0 %v797_v29  ;;  %v793_v46 = vor.u32 %v1082_v40, %v790_v41  ;;  %v1081_v48 = vld [vmem:[#allocation2 + $0x34] sm:$0xf0]  ;;  %v844_v49 = vld [vmem:[#allocation2 + $0xb0] sm:$0xf] }
  0x1a   :  { %292 = vmatpush.bf16.msra.mxu1 %v861_v33  ;;  %v857_v50 = vor.u32 %v1098_v42, %v854_v43  ;;  %v1097_v51 = vld [vmem:[#allocation2 + $0xb4] sm:$0xf0]  ;;  %v1080_v52 = vld [vmem:[#allocation2 + $0x34] sm:$0xf]  ;;  %v782_v53 = vld [vmem:[#allocation2 + $0x38] sm:$0xf0]  ;;  %v781_v56 = vor.u32 %v1081_v48, %v780_v47 }
  0x1b   :  { %305 = vmatpush.bf16.msra.mxu2 %v801_v34  ;;  %v1096_v54 = vld [vmem:[#allocation2 + $0xb4] sm:$0xf]  ;;  %v846_v55 = vld [vmem:[#allocation2 + $0xb8] sm:$0xf0]  ;;  %v845_v57 = vor.u32 %v1097_v51, %v844_v49  ;;  %v785_v58 = vor.u32 %v1080_v52, %v782_v53  ;;  %v772_v59 = vld [vmem:[#allocation2 + $0x20] sm:$0xf] }
  0x1c   :  { %318 = vmatpush.bf16.msra.mxu3 %v865_v38  ;;  %v1079_v60 = vld [vmem:[#allocation2 + $0x24] sm:$0xf0]  ;;  %v836_v61 = vld [vmem:[#allocation2 + $0xa0] sm:$0xf]  ;;  %v849_v62 = vor.u32 %v1096_v54, %v846_v55  ;;  %v1078_v0 = vld [vmem:[#allocation2 + $0x24] sm:$0xf] }
  0x1d   :  { %280 = vmatpush.bf16.msra.mxu0 %v789_v44  ;;  %v1095_v63 = vld [vmem:[#allocation2 + $0xa4] sm:$0xf0]  ;;  %v774_v1 = vld [vmem:[#allocation2 + $0x28] sm:$0xf0]  ;;  %v1094_v2 = vld [vmem:[#allocation2 + $0xa4] sm:$0xf]  ;;  %v773_v4 = vor.u32 %v1079_v60, %v772_v59 }
  0x1e   :  { %293 = vmatpush.bf16.msra.mxu1 %v853_v45  ;;  %v838_v3 = vld [vmem:[#allocation2 + $0xa8] sm:$0xf0]  ;;  %v837_v5 = vor.u32 %v1095_v63, %v836_v61  ;;  %v777_v6 = vor.u32 %v1078_v0, %v774_v1  ;;  %v764_v7 = vld [vmem:[#allocation2 + $0x10] sm:$0xf]  ;;  %v1077_v8 = vld [vmem:[#allocation2 + $0x14] sm:$0xf0] }
  0x1f   :  { %306 = vmatpush.bf16.msra.mxu2 %v793_v46  ;;  %v828_v9 = vld [vmem:[#allocation2 + $0x90] sm:$0xf]  ;;  %v841_v10 = vor.u32 %v1094_v2, %v838_v3  ;;  %v1093_v11 = vld [vmem:[#allocation2 + $0x94] sm:$0xf0]  ;;  %v1076_v12 = vld [vmem:[#allocation2 + $0x14] sm:$0xf]  ;;  %v765_v16 = vor.u32 %v1077_v8, %v764_v7 }
  0x20   :  { %319 = vmatpush.bf16.msra.mxu3 %v857_v50  ;;  %v766_v13 = vld [vmem:[#allocation2 + $0x18] sm:$0xf0]  ;;  %v1092_v14 = vld [vmem:[#allocation2 + $0x94] sm:$0xf]  ;;  %v756_v17 = vld [vmem:[#allocation2] sm:$0xf]  ;;  %v829_v18 = vor.u32 %v1093_v11, %v828_v9 }
  0x21   :  { %281 = vmatpush.bf16.msra.mxu0 %v781_v56  ;;  %v830_v15 = vld [vmem:[#allocation2 + $0x98] sm:$0xf0]  ;;  %v769_v19 = vor.u32 %v1076_v12, %v766_v13  ;;  %v1075_v20 = vld [vmem:[#allocation2 + $0x4] sm:$0xf0]  ;;  %v820_v21 = vld [vmem:[#allocation2 + $0x80] sm:$0xf] }
  0x22   :  { %294 = vmatpush.bf16.msra.mxu1 %v845_v57  ;;  %v1091_v22 = vld [vmem:[#allocation2 + $0x84] sm:$0xf0]  ;;  %v833_v23 = vor.u32 %v1092_v14, %v830_v15  ;;  %v1074_v24 = vld [vmem:[#allocation2 + $0x4] sm:$0xf]  ;;  %v758_v25 = vld [vmem:[#allocation2 + $0x8] sm:$0xf0]  ;;  %v757_v30 = vor.u32 %v1075_v20, %v756_v17 }
  0x23   :  { %307 = vmatpush.bf16.msra.mxu2 %v785_v58  ;;  %v1090_v26 = vld [vmem:[#allocation2 + $0x84] sm:$0xf]  ;;  %v822_v27 = vld [vmem:[#allocation2 + $0x88] sm:$0xf0]  ;;  %v940_v28 = vld [vmem:[#allocation4 + $0x70] sm:$0xf]  ;;  %v821_v34 = vor.u32 %v1091_v22, %v820_v21  ;;  %v761_v35 = vor.u32 %v1074_v24, %v758_v25 }
  0x24   :  { %320 = vmatpush.bf16.msra.mxu3 %v849_v62  ;;  %v1121_v29 = vld [vmem:[#allocation4 + $0x74] sm:$0xf0]  ;;  %v75_v31 = vld [vmem:[%s1323_s0] sm:$0xff]  ;;  %v1004_v32 = vld [vmem:[#allocation4 + $0xf0] sm:$0xf]  ;;  %v825_v37 = vor.u32 %v1090_v26, %v822_v27 }
  0x25   :  { %282 = vmatpush.bf16.msra.mxu0 %v773_v4  ;;  %v1137_v33 = vld [vmem:[#allocation4 + $0xf4] sm:$0xf0]  ;;  %v76_v36 = vld [vmem:[%s1323_s0 + $0x8] sm:$0xff]  ;;  %v941_v38 = vor.u32 %v1121_v29, %v940_v28  ;;  %v932_v39 = vld [vmem:[#allocation4 + $0x60] sm:$0xf]  ;;  %v77_v42 = vpack.c.bf16 %v75_v31, %v75_v31 }
  0x26   :  { %295 = vmatpush.bf16.msra.mxu1 %v837_v5  ;;  %v1120_v40 = vld [vmem:[#allocation4 + $0x74] sm:$0xf]  ;;  %v942_v41 = vld [vmem:[#allocation4 + $0x78] sm:$0xf0]  ;;  %v1119_v43 = vld [vmem:[#allocation4 + $0x64] sm:$0xf0]  ;;  %v1005_v44 = vor.u32 %v1137_v33, %v1004_v32  ;;  %v78_v47 = vpack.c.bf16 %v76_v36, %v76_v36 }
  0x27   :  { %308 = vmatpush.bf16.msra.mxu2 %v777_v6  ;;  %v1136_v45 = vld [vmem:[#allocation4 + $0xf4] sm:$0xf]  ;;  %v1006_v46 = vld [vmem:[#allocation4 + $0xf8] sm:$0xf0]  ;;  %v996_v48 = vld [vmem:[#allocation4 + $0xe0] sm:$0xf]  ;;  %v945_v50 = vor.u32 %v1120_v40, %v942_v41  ;;  %v933_v51 = vor.u32 %v1119_v43, %v932_v39 }
  0x28   :  { %321 = vmatpush.bf16.msra.mxu3 %v841_v10  ;;  %v1135_v49 = vld [vmem:[#allocation4 + $0xe4] sm:$0xf0]  ;;  %v924_v52 = vld [vmem:[#allocation4 + $0x50] sm:$0xf]  ;;  %v1118_v53 = vld [vmem:[#allocation4 + $0x64] sm:$0xf]  ;;  %v1009_v55 = vor.u32 %v1136_v45, %v1006_v46 }
  0x29   :  { %283 = vmatpush.bf16.msra.mxu0 %v765_v16  ;;  %v934_v54 = vld [vmem:[#allocation4 + $0x68] sm:$0xf0]  ;;  %v1117_v56 = vld [vmem:[#allocation4 + $0x54] sm:$0xf0]  ;;  %v997_v57 = vor.u32 %v1135_v49, %v996_v48  ;;  %v1134_v58 = vld [vmem:[#allocation4 + $0xe4] sm:$0xf] }
  0x2a   :  { %296 = vmatpush.bf16.msra.mxu1 %v829_v18  ;;  %v998_v59 = vld [vmem:[#allocation4 + $0xe8] sm:$0xf0]  ;;  %v988_v60 = vld [vmem:[#allocation4 + $0xd0] sm:$0xf]  ;;  %v1133_v61 = vld [vmem:[#allocation4 + $0xd4] sm:$0xf0]  ;;  %v937_v62 = vor.u32 %v1118_v53, %v934_v54  ;;  %v925_v63 = vor.u32 %v1117_v56, %v924_v52 }
  0x2b   :  { %309 = vmatpush.bf16.msra.mxu2 %v769_v19  ;;  %v916_v0 = vld [vmem:[#allocation4 + $0x40] sm:$0xf]  ;;  %v1116_v1 = vld [vmem:[#allocation4 + $0x54] sm:$0xf]  ;;  %v926_v2 = vld [vmem:[#allocation4 + $0x58] sm:$0xf0]  ;;  %v1001_v3 = vor.u32 %v1134_v58, %v998_v59  ;;  %v989_v5 = vor.u32 %v1133_v61, %v988_v60 }
  0x2c   :  { %322 = vmatpush.bf16.msra.mxu3 %v833_v23  ;;  %v1115_v4 = vld [vmem:[#allocation4 + $0x44] sm:$0xf0]  ;;  %v1132_v6 = vld [vmem:[#allocation4 + $0xd4] sm:$0xf]  ;;  %v990_v7 = vld [vmem:[#allocation4 + $0xd8] sm:$0xf0]  ;;  %v929_v10 = vor.u32 %v1116_v1, %v926_v2 }
  0x2d   :  { %284 = vmatpush.bf16.msra.mxu0 %v757_v30  ;;  %v980_v8 = vld [vmem:[#allocation4 + $0xc0] sm:$0xf]  ;;  %v1131_v9 = vld [vmem:[#allocation4 + $0xc4] sm:$0xf0]  ;;  %v917_v11 = vor.u32 %v1115_v4, %v916_v0  ;;  %v908_v12 = vld [vmem:[#allocation4 + $0x30] sm:$0xf]  ;;  %v993_v15 = vor.u32 %v1132_v6, %v990_v7 }
  0x2e   :  { %297 = vmatpush.bf16.msra.mxu1 %v821_v34  ;;  %v1114_v13 = vld [vmem:[#allocation4 + $0x44] sm:$0xf]  ;;  %v918_v14 = vld [vmem:[#allocation4 + $0x48] sm:$0xf0]  ;;  %v1113_v16 = vld [vmem:[#allocation4 + $0x34] sm:$0xf0]  ;;  %v981_v17 = vor.u32 %v1131_v9, %v980_v8 }
  0x2f   :  { %310 = vmatpush.bf16.msra.mxu2 %v761_v35  ;;  %v1130_v18 = vld [vmem:[#allocation4 + $0xc4] sm:$0xf]  ;;  %v982_v19 = vld [vmem:[#allocation4 + $0xc8] sm:$0xf0]  ;;  %v972_v20 = vld [vmem:[#allocation4 + $0xb0] sm:$0xf]  ;;  %v921_v22 = vor.u32 %v1114_v13, %v918_v14  ;;  %v909_v23 = vor.u32 %v1113_v16, %v908_v12 }
  0x30   :  { %323 = vmatpush.bf16.msra.mxu3 %v825_v37  ;;  %285 = vmatmul.bf16.vlgmr.msra.gmra.mxu0 %v77_v42  ;;  %v1129_v21 = vld [vmem:[#allocation4 + $0xb4] sm:$0xf0]  ;;  %v1112_v24 = vld [vmem:[#allocation4 + $0x34] sm:$0xf]  ;;  %v910_v25 = vld [vmem:[#allocation4 + $0x38] sm:$0xf0]  ;;  %v985_v26 = vor.u32 %v1130_v18, %v982_v19 }
  0x31   :  { %531 = vmatpush.bf16.msrb.mxu0 %v941_v38  ;;  %298 = vmatmul.bf16.vlgmr.msra.gmra.mxu1 %v78_v47  ;;  %v900_v27 = vld [vmem:[#allocation4 + $0x20] sm:$0xf]  ;;  %v1111_v28 = vld [vmem:[#allocation4 + $0x24] sm:$0xf0]  ;;  %v973_v29 = vor.u32 %v1129_v21, %v972_v20  ;;  %v913_v32 = vor.u32 %v1112_v24, %v910_v25  ;;  %v1110_v34 = vld [vmem:[#allocation4 + $0x24] sm:$0xf] }
  0x32   :  { %544 = vmatpush.bf16.msrb.mxu1 %v1005_v44  ;;  %311 = vmatmul.bf16.vlgmr.msra.gmra.mxu2 %v77_v42  ;;  %v964_v30 = vld [vmem:[#allocation4 + $0xa0] sm:$0xf]  ;;  %v1127_v31 = vld [vmem:[#allocation4 + $0xa4] sm:$0xf0]  ;;  %v901_v33 = vor.u32 %v1111_v28, %v900_v27  ;;  %v902_v35 = vld [vmem:[#allocation4 + $0x28] sm:$0xf0] }
  0x33   :  { %324 = vmatmul.bf16.vlgmr.msra.gmra.mxu3 %v78_v47  ;;  %557 = vmatpush.bf16.msrb.mxu2 %v945_v50  ;;  %v892_v36 = vld [vmem:[#allocation4 + $0x10] sm:$0xf]  ;;  %v1109_v37 = vld [vmem:[#allocation4 + $0x14] sm:$0xf0]  ;;  %v965_v38 = vor.u32 %v1127_v31, %v964_v30  ;;  %v905_v41 = vor.u32 %v1110_v34, %v902_v35  ;;  %v884_v43 = vld [vmem:[#allocation4] sm:$0xf] }
  0x34   :  { %570 = vmatpush.bf16.msrb.mxu3 %v1009_v55  ;;  %v956_v39 = vld [vmem:[#allocation4 + $0x90] sm:$0xf]  ;;  %v1125_v40 = vld [vmem:[#allocation4 + $0x94] sm:$0xf0]  ;;  %v893_v42 = vor.u32 %v1109_v37, %v892_v36  ;;  %v1107_v44 = vld [vmem:[#allocation4 + $0x4] sm:$0xf0] }
  0x35   :  { %532 = vmatpush.bf16.msrb.mxu0 %v933_v51  ;;  %v957_v45 = vor.u32 %v1125_v40, %v956_v39  ;;  %v948_v46 = vld [vmem:[#allocation4 + $0x80] sm:$0xf]  ;;  %v1123_v47 = vld [vmem:[#allocation4 + $0x84] sm:$0xf0]  ;;  %v885_v48 = vor.u32 %v1107_v44, %v884_v43  ;;  %v1145_v49 = vld [vmem:[#allocation6 + $0x38] sm:$0xff] }
  0x36   :  { %545 = vmatpush.bf16.msrb.mxu1 %v997_v57  ;;  %v949_v50 = vor.u32 %v1123_v47, %v948_v46  ;;  %v1144_v51 = vld [vmem:[#allocation6 + $0x30] sm:$0xff]  ;;  %v974_v53 = vld [vmem:[#allocation4 + $0xb8] sm:$0xf0]  ;;  %v1143_v59 = vld [vmem:[#allocation6 + $0x28] sm:$0xff] }
  0x37   :  { %558 = vmatpush.bf16.msrb.mxu2 %v937_v62  ;;  %v1128_v52 = vld [vmem:[#allocation4 + $0xb4] sm:$0xf]  ;;  %v1153_v55 = vld [vmem:[#allocation6 + $0x78] sm:$0xff]  ;;  %v1126_v60 = vld [vmem:[#allocation4 + $0xa4] sm:$0xf] }
  0x38   :  { %571 = vmatpush.bf16.msrb.mxu3 %v1001_v3  ;;  %v977_v54 = vor.u32 %v1128_v52, %v974_v53  ;;  %v1108_v56 = vld [vmem:[#allocation4 + $0x14] sm:$0xf]  ;;  %v894_v57 = vld [vmem:[#allocation4 + $0x18] sm:$0xf0]  ;;  %v966_v61 = vld [vmem:[#allocation4 + $0xa8] sm:$0xf0] }
  0x39   :  { %533 = vmatpush.bf16.msrb.mxu0 %v925_v63  ;;  %v897_v58 = vor.u32 %v1108_v56, %v894_v57  ;;  %v969_v62 = vor.u32 %v1126_v60, %v966_v61  ;;  %v1152_v63 = vld [vmem:[#allocation6 + $0x70] sm:$0xff]  ;;  %v1106_v0 = vld [vmem:[#allocation4 + $0x4] sm:$0xf]  ;;  %v886_v1 = vld [vmem:[#allocation4 + $0x8] sm:$0xf0] }
  0x3a   :  { %546 = vmatpush.bf16.msrb.mxu1 %v989_v5  ;;  %v889_v2 = vor.u32 %v1106_v0, %v886_v1  ;;  %v1142_v3 = vld [vmem:[#allocation6 + $0x20] sm:$0xff]  ;;  %v1124_v4 = vld [vmem:[#allocation4 + $0x94] sm:$0xf]  ;;  %v958_v5 = vld [vmem:[#allocation4 + $0x98] sm:$0xf0] }
  0x3b   :  { %559 = vmatpush.bf16.msrb.mxu2 %v929_v10  ;;  %v961_v6 = vor.u32 %v1124_v4, %v958_v5  ;;  %v1151_v7 = vld [vmem:[#allocation6 + $0x68] sm:$0xff]  ;;  %v1141_v8 = vld [vmem:[#allocation6 + $0x18] sm:$0xff]  ;;  %v1122_v9 = vld [vmem:[#allocation4 + $0x84] sm:$0xf] }
  0x3c   :  { %572 = vmatpush.bf16.msrb.mxu3 %v993_v15  ;;  %v950_v10 = vld [vmem:[#allocation4 + $0x88] sm:$0xf0]  ;;  %v1150_v12 = vld [vmem:[#allocation6 + $0x60] sm:$0xff]  ;;  %v1140_v13 = vld [vmem:[#allocation6 + $0x10] sm:$0xff] }
  0x3d   :  { %534 = vmatpush.bf16.msrb.mxu0 %v917_v11  ;;  %v953_v11 = vor.u32 %v1122_v9, %v950_v10  ;;  %v1149_v14 = vld [vmem:[#allocation6 + $0x58] sm:$0xff]  ;;  %v1139_v15 = vld [vmem:[#allocation6 + $0x8] sm:$0xff]  ;;  %v1148_v16 = vld [vmem:[#allocation6 + $0x50] sm:$0xff] }
  0x3e   :  { %547 = vmatpush.bf16.msrb.mxu1 %v981_v17  ;;  %v1138_v17 = vld [vmem:[#allocation6] sm:$0xff]  ;;  %v1147_v18 = vld [vmem:[#allocation6 + $0x48] sm:$0xff] }
  0x3f   :  { %560 = vmatpush.bf16.msrb.mxu2 %v921_v22  ;;  %v111_v19 = vld [vmem:[%s1325_s2] sm:$0x3] }
  0x40   :  { %573 = vmatpush.bf16.msrb.mxu3 %v985_v26  ;;  %v1146_v20 = vld [vmem:[#allocation6 + $0x40] sm:$0xff]  ;;  %v113_v21 = vperm.slane %v111_v19, 0  ;;  %v114_v26 = vperm.slane %v111_v19, 1 }
  0x41   :  { %535 = vmatpush.bf16.msrb.mxu0 %v909_v23  ;;  %v365_v39 = vld [vmem:[%s1327_s4] sm:$0x3] }
  0x42   :  { %548 = vmatpush.bf16.msrb.mxu1 %v973_v29  ;;  %v367_v40 = vperm.slane %v365_v39, 0  ;;  %v368_v43 = vperm.slane %v365_v39, 1 }
  0x43   :  { %561 = vmatpush.bf16.msrb.mxu2 %v913_v32 }
  0x44   :  { %574 = vmatpush.bf16.msrb.mxu3 %v977_v54  ;;  %v1161_v54 = vld [vmem:[%s1329_s6] ss:$0 sm:$0xff] }
  0x45   :  { %536 = vmatpush.bf16.msrb.mxu0 %v901_v33 }
  0x46   :  { %549 = vmatpush.bf16.msrb.mxu1 %v965_v38 }
  0x47   :  { %562 = vmatpush.bf16.msrb.mxu2 %v905_v41 }
  0x48   :  { %575 = vmatpush.bf16.msrb.mxu3 %v969_v62 }
  0x49   :  { %537 = vmatpush.bf16.msrb.mxu0 %v893_v42 }
  0x4a   :  { %550 = vmatpush.bf16.msrb.mxu1 %v957_v45 }
  0x4b   :  { %563 = vmatpush.bf16.msrb.mxu2 %v897_v58 }
  0x4c   :  { %576 = vmatpush.bf16.msrb.mxu3 %v961_v6 }
  0x4d   :  { %538 = vmatpush.bf16.msrb.mxu0 %v885_v48 }
  0x4e   :  { %551 = vmatpush.bf16.msrb.mxu1 %v949_v50 }
  0x4f   :  { %564 = vmatpush.bf16.msrb.mxu2 %v889_v2 }
  0x50   :  { %577 = vmatpush.bf16.msrb.mxu3 %v953_v11 }
  0x51   :  { %717 = vmatpush.bf16.msra.mxu0 %v1145_v49 }
  0x52   :  { %730 = vmatpush.bf16.msra.mxu1 %v1153_v55 }
  0x55   :  { %718 = vmatpush.bf16.msra.mxu0 %v1144_v51 }
  0x56   :  { %731 = vmatpush.bf16.msra.mxu1 %v1152_v63 }
  0x59   :  { %719 = vmatpush.bf16.msra.mxu0 %v1143_v59 }
  0x5a   :  { %732 = vmatpush.bf16.msra.mxu1 %v1151_v7 }
  0x5d   :  { %720 = vmatpush.bf16.msra.mxu0 %v1142_v3 }
  0x5e   :  { %733 = vmatpush.bf16.msra.mxu1 %v1150_v12 }
  0x61   :  { %721 = vmatpush.bf16.msra.mxu0 %v1141_v8 }
  0x62   :  { %734 = vmatpush.bf16.msra.mxu1 %v1149_v14 }
  0x65   :  { %722 = vmatpush.bf16.msra.mxu0 %v1140_v13 }
  0x66   :  { %735 = vmatpush.bf16.msra.mxu1 %v1148_v16 }
  0x69   :  { %723 = vmatpush.bf16.msra.mxu0 %v1139_v15 }
  0x6a   :  { %736 = vmatpush.bf16.msra.mxu1 %v1147_v18 }
  0x6d   :  { %724 = vmatpush.bf16.msra.mxu0 %v1138_v17 }
  0x6e   :  { %737 = vmatpush.bf16.msra.mxu1 %v1146_v20 }
  0xad   :  { %v286_v22 = vpop.f32.mrf.mxu0 }
  0xae   :  { %v287_v23 = vadd.f32 %v286_v22, %v113_v21  ;;  %v299_v24 = vpop.f32.mrf.mxu1 }
  0xb0   :  { %v300_v25 = vadd.f32 %v299_v24, %v287_v23 }
  0xb2   :  { %v329_v27 = vmax.f32 %v300_v25, 0.0 }
  0xb4   :  { %v331_v28 = vpack.c.bf16 %v329_v27, %v329_v27 }
  0xb5   :  { %v312_v29 = vpop.f32.mrf.mxu2  ;;  %v288_v32 = vpop.f32.mrf.mxu0 }
  0xb6   :  { %v313_v30 = vadd.f32 %v312_v29, %v114_v26  ;;  %v325_v31 = vpop.f32.mrf.mxu3  ;;  %v301_v33 = vpop.f32.mrf.mxu1  ;;  %539 = vmatmul.bf16.vlgmr.msrb.gmra.mxu0 %v331_v28  ;;  %565 = vmatmul.bf16.vlgmr.msrb.gmra.mxu2 %v331_v28 }
  0xb8   :  { %v326_v34 = vadd.f32 %v325_v31, %v313_v30 }
  0xba   :  { %v330_v35 = vmax.f32 %v326_v34, 0.0 }
  0xbc   :  { %v332_v36 = vpack.c.bf16 %v330_v35, %v330_v35 }
  0xbd   :  { %v314_v37 = vpop.f32.mrf.mxu2 }
  0xbe   :  { %v327_v38 = vpop.f32.mrf.mxu3  ;;  %552 = vmatmul.bf16.vlgmr.msrb.gmra.mxu1 %v332_v36  ;;  %578 = vmatmul.bf16.vlgmr.msrb.gmra.mxu3 %v332_v36 }
  0xc6   :  { %725 = vmatmul.bf16.vlgmr.msra.gmra.mxu0 %v331_v28 }
  0xce   :  { %738 = vmatmul.bf16.vlgmr.msra.gmra.mxu1 %v332_v36 }
 0x133   :  { %v540_v41 = vpop.f32.mrf.mxu0 }
 0x134   :  { %v541_v42 = vadd.f32 %v540_v41, %v367_v40 }
 0x139   :  { %v566_v44 = vpop.f32.mrf.mxu2 }
 0x13a   :  { %v567_v48 = vadd.f32 %v566_v44, %v368_v43 }
 0x13b   :  { %v553_v45 = vpop.f32.mrf.mxu1  ;;  %v542_v47 = vpop.f32.mrf.mxu0 }
 0x13c   :  { %v554_v46 = vadd.f32 %v553_v45, %v541_v42 }
 0x13e   :  { %583 = vst [vmem:[%s1330_s7] sm:$0xff] %v554_v46 }
 0x141   :  { %v579_v49 = vpop.f32.mrf.mxu3  ;;  %v568_v51 = vpop.f32.mrf.mxu2 }
 0x142   :  { %v580_v50 = vadd.f32 %v579_v49, %v567_v48 }
 0x143   :  { %v555_v52 = vpop.f32.mrf.mxu1  ;;  %v726_v53 = vpop.f32.mrf.mxu0 }
 0x144   :  { %584 = vst [vmem:[%s1330_s7 + $0x8] sm:$0xff] %v580_v50  ;;  %v727_v56 = vadd.f32 %v1161_v54, %v726_v53 }
 0x149   :  { %v581_v55 = vpop.f32.mrf.mxu3 }
 0x14b   :  { %v739_v57 = vpop.f32.mrf.mxu1  ;;  %v728_v59 = vpop.f32.mrf.mxu0 }
 0x14c   :  { %v740_v58 = vadd.f32 %v739_v57, %v727_v56 }
 0x14e   :  { %743 = vst [vmem:[%s1331_s8] sm:$0xff] %v740_v58 }
 0x153   :  { %v741_v60 = vpop.f32.mrf.mxu1 }
 0x154   :  { %752 = vsyncpa [#allocation3], 1 }
 0x155   :  { %753 = vsyncpa [#allocation5], 1 }

</bundles_post_ra>
